<compile_context>
chip_gen: v7x
topology: tpu7x:2x2x1
jax: 0.10.0
libtpu: 0.0.40
codegen_flags: <defaults>
</compile_context>

<pallas_src>
import functools

import jax
import jax.numpy as jnp
from jax import lax
from jax.experimental import pallas as pl
from jax.experimental.pallas import tpu as pltpu


def _round_up(n, m):
    return ((n + m - 1) // m) * m


def _choose_tile(batch, block_b, min_steps):
    """Batch tile: multiple of 8, <= block_b, and >= min_steps grid iterations."""
    b8 = _round_up(max(batch, 1), 8)
    tb = _round_up(pl.cdiv(b8, min_steps), 8)       # aim for >= min_steps steps
    tb = max(8, min(_round_up(block_b, 8), tb))     # cap per-step rows
    b_pad = _round_up(b8, tb)
    return tb, b_pad


# ---------------------------------------------------------------------------
# Kernel
# ---------------------------------------------------------------------------
def _policy_value_kernel(x_ref, w1_ref, b1_ref, wh_ref, bh_ref, out_ref, *,
                         num_actions, lse_lane):
    x = x_ref[...]                                                       # [TB, in]
    # fc1 + ReLU (f32 accumulation on the MXU)
    h = jnp.dot(x, w1_ref[...], preferred_element_type=jnp.float32) + b1_ref[...]
    h = jnp.maximum(h, 0.0)                                              # [TB, hidden]
    # fused policy+value head: one MXU push -> [TB, out_width]
    head = jnp.dot(h, wh_ref[...], preferred_element_type=jnp.float32) + bh_ref[...]
    # logsumexp over the real policy lanes only (value + padded lanes masked to -inf)
    lane = lax.broadcasted_iota(jnp.int32, head.shape, 1)                # [TB, out_width]
    logits_masked = jnp.where(lane < num_actions, head, -jnp.inf)
    m = jnp.max(logits_masked, axis=-1, keepdims=True)
    lse = m + jnp.log(jnp.sum(jnp.exp(logits_masked - m), axis=-1, keepdims=True))
    # pack lse into its own lane of the narrow output slab
    out_ref[...] = jnp.where(lane == lse_lane, lse, head)


# ---------------------------------------------------------------------------
# One-time parameter preparation (hoisted out of the per-call path)
# ---------------------------------------------------------------------------
def fuse_params(params):
    """Fuse policy+value heads into one weight/bias and reshape biases. Call ONCE."""
    w1, b1, wp, bp, wv, bv = params
    hidden = w1.shape[1]
    P = wp.shape[1]
    V = wv.shape[1]
    out_width = _round_up(P + V + 1, 8)            # logits | value | lse | pad
    whead = (jnp.zeros((hidden, out_width), jnp.float32)
             .at[:, :P].set(wp.astype(jnp.float32))
             .at[:, P:P + V].set(wv.astype(jnp.float32)))
    bhead = (jnp.zeros((1, out_width), jnp.float32)
             .at[:, :P].set(bp.reshape(1, P).astype(jnp.float32))
             .at[:, P:P + V].set(bv.reshape(1, V).astype(jnp.float32)))
    b1_2d = b1.reshape(1, hidden).astype(jnp.float32)
    return (w1.astype(jnp.float32), b1_2d, whead, bhead)


# ---------------------------------------------------------------------------
# Forward wrapper
# ---------------------------------------------------------------------------
def policy_value_forward(x, fused_params, *, num_actions, num_values,
                         block_b=8192, min_grid_steps=4):
    """x: [B, input_size] f32; fused_params from fuse_params().
    Returns (logits [B,P], log_probs [B,P], value [B,V])."""
    w1, b1_2d, whead, bhead = fused_params
    B, input_size = x.shape
    hidden = w1.shape[1]
    out_width = whead.shape[1]
    P, V = num_actions, num_values

    tb, b_pad = _choose_tile(B, block_b, min_grid_steps)
    if b_pad != B:
        x = jnp.pad(x, ((0, b_pad - B), (0, 0)))
    grid = (b_pad // tb,)

    cost = pl.CostEstimate(
        flops=2 * b_pad * (input_size * hidden + hidden * out_width),
        transcendentals=b_pad * out_width,
        bytes_accessed=4 * (b_pad * input_size                 # x read
                            + input_size * hidden + hidden     # W1, b1
                            + hidden * out_width + out_width   # fused head
                            + b_pad * out_width),              # output writeback
    )

    kernel = functools.partial(_policy_value_kernel,
                               num_actions=P, lse_lane=P + V)

    out = pl.pallas_call(
        kernel,
        out_shape=jax.ShapeDtypeStruct((b_pad, out_width), jnp.float32),
        grid=grid,
        in_specs=[
            pl.BlockSpec((tb, input_size), lambda i: (i, 0)),       # x: tiled over batch
            pl.BlockSpec((input_size, hidden), lambda i: (0, 0)),   # W1: VMEM-resident
            pl.BlockSpec((1, hidden), lambda i: (0, 0)),            # b1
            pl.BlockSpec((hidden, out_width), lambda i: (0, 0)),    # fused head W
            pl.BlockSpec((1, out_width), lambda i: (0, 0)),         # fused head b
        ],
        out_specs=pl.BlockSpec((tb, out_width), lambda i: (i, 0)),
        compiler_params=pltpu.CompilerParams(
            dimension_semantics=("parallel",)),                     # batch -> both v7x TCs
        cost_estimate=cost,
    )(x, w1, b1_2d, whead, bhead)

    logits = out[:B, :P]
    value = out[:B, P:P + V]
    lse = out[:B, P + V:P + V + 1]
    log_probs = logits - lse            # exact f32; trivial broadcast subtract
    return logits, log_probs, value


# ---------------------------------------------------------------------------
# PyTorch-style init (nn.Linear default: U(-1/sqrt(fan_in), +1/sqrt(fan_in)))
# ---------------------------------------------------------------------------
def init_params(key, input_size=8, hidden_size=128, policy_output_size=4,
                value_output_size=1):
    ks = jax.random.split(key, 6)

    def lin(kw, kb, fan_in, fan_out):
        bound = 1.0 / jnp.sqrt(jnp.float32(fan_in))
        w = jax.random.uniform(kw, (fan_in, fan_out), jnp.float32, -bound, bound)
        b = jax.random.uniform(kb, (fan_out,), jnp.float32, -bound, bound)
        return w, b

    w1, b1 = lin(ks[0], ks[1], input_size, hidden_size)
    wp, bp = lin(ks[2], ks[3], hidden_size, policy_output_size)
    wv, bv = lin(ks[4], ks[5], hidden_size, value_output_size)
    return (w1, b1, wp, bp, wv, bv)


if __name__ == "__main__":
    key = jax.random.PRNGKey(0)
    k_params, k_x = jax.random.split(key)

    B, input_size, hidden_size, policy_out, value_out = 2, 8, 128, 4, 1
    params = init_params(k_params, input_size, hidden_size, policy_out, value_out)
    x = jax.random.normal(k_x, (B, input_size), jnp.float32)

    # One-time parameter prep (hoisted out of the per-call forward path).
    fused = jax.block_until_ready(fuse_params(params))

    fwd = jax.jit(functools.partial(policy_value_forward,
                                    num_actions=policy_out, num_values=value_out))
    logits, log_probs, value = fwd(x, fused)
    jax.block_until_ready((logits, log_probs, value))

    # Cross-check against pure-JAX reference.
    w1, b1, wp, bp, wv, bv = params
    h = jnp.maximum(x @ w1 + b1[None, :], 0.0)
    ref_logits = h @ wp + bp[None, :]
    ref_value = h @ wv + bv[None, :]
    ref_logprobs = ref_logits - jax.scipy.special.logsumexp(
        ref_logits, axis=-1, keepdims=True)

    assert logits.shape == (B, policy_out) and value.shape == (B, value_out)
    assert jnp.allclose(logits, ref_logits, atol=1e-5), "logits mismatch"
    assert jnp.allclose(log_probs, ref_logprobs, atol=1e-5), "log_probs mismatch"
    assert jnp.allclose(value, ref_value, atol=1e-5), "value mismatch"

    print("KERNEL_OK")
</pallas_src>

<mosaic_0001>
module attributes {stable_mosaic.version = 11 : i64} {
  func.func @_policy_value_kernel(%arg0: i32, %arg1: memref<8x8xf32, #tpu.memory_space<vmem>>, %arg2: memref<8x128xf32, #tpu.memory_space<vmem>>, %arg3: memref<1x128xf32, #tpu.memory_space<vmem>>, %arg4: memref<128x8xf32, #tpu.memory_space<vmem>>, %arg5: memref<1x8xf32, #tpu.memory_space<vmem>>, %arg6: memref<8x8xf32, #tpu.memory_space<vmem>>) attributes {dimension_semantics = [#tpu.dimension_semantics<parallel>], iteration_bounds = array<i64: 1>, scalar_prefetch = 0 : i64, scratch_operands = 0 : i64, tpu.core_type = #tpu.core_type<tc>, window_params = [{transform_indices = @transform_0, window_bounds = array<i64: 8, 8>}, {pipeline_mode = #tpu.pipeline_mode<synchronous>, transform_indices = @transform_1, window_bounds = array<i64: 8, 128>}, {pipeline_mode = #tpu.pipeline_mode<synchronous>, transform_indices = @transform_2, window_bounds = array<i64: 1, 128>}, {pipeline_mode = #tpu.pipeline_mode<synchronous>, transform_indices = @transform_3, window_bounds = array<i64: 128, 8>}, {pipeline_mode = #tpu.pipeline_mode<synchronous>, transform_indices = @transform_4, window_bounds = array<i64: 1, 8>}, {transform_indices = @transform_5, window_bounds = array<i64: 8, 8>}]} {
    %c0 = arith.constant 0 : index
    %c0_0 = arith.constant 0 : index
    %0 = vector.load %arg1[%c0, %c0_0] : memref<8x8xf32, #tpu.memory_space<vmem>>, vector<8x8xf32>
    %c0_1 = arith.constant 0 : index
    %c0_2 = arith.constant 0 : index
    %1 = vector.load %arg2[%c0_1, %c0_2] : memref<8x128xf32, #tpu.memory_space<vmem>>, vector<8x128xf32>
    %cst = arith.constant dense<0.000000e+00> : vector<8x128xf32>
    %2 = tpu.matmul %0, %1, %cst {dimension_numbers = #tpu.dot_dimension_numbers<[1], [0], [0], [1], [0, 0, 1, 1], [], []>} : vector<8x8xf32>, vector<8x128xf32>, vector<8x128xf32> -> vector<8x128xf32>
    %c0_3 = arith.constant 0 : index
    %c0_4 = arith.constant 0 : index
    %3 = vector.load %arg3[%c0_3, %c0_4] : memref<1x128xf32, #tpu.memory_space<vmem>>, vector<1x128xf32>
    %4 = vector.broadcast %3 : vector<1x128xf32> to vector<8x128xf32>
    %5 = arith.addf %2, %4 : vector<8x128xf32>
    %cst_5 = arith.constant 0.000000e+00 : f32
    %6 = vector.broadcast %cst_5 : f32 to vector<8x128xf32>
    %7 = arith.maximumf %5, %6 : vector<8x128xf32>
    %c0_6 = arith.constant 0 : index
    %c0_7 = arith.constant 0 : index
    %8 = vector.load %arg4[%c0_6, %c0_7] : memref<128x8xf32, #tpu.memory_space<vmem>>, vector<128x8xf32>
    %cst_8 = arith.constant dense<0.000000e+00> : vector<8x8xf32>
    %9 = tpu.matmul %7, %8, %cst_8 {dimension_numbers = #tpu.dot_dimension_numbers<[1], [0], [0], [1], [0, 0, 1, 1], [], []>} : vector<8x128xf32>, vector<128x8xf32>, vector<8x8xf32> -> vector<8x8xf32>
    %c0_9 = arith.constant 0 : index
    %c0_10 = arith.constant 0 : index
    %10 = vector.load %arg5[%c0_9, %c0_10] : memref<1x8xf32, #tpu.memory_space<vmem>>, vector<1x8xf32>
    %11 = vector.broadcast %10 : vector<1x8xf32> to vector<8x8xf32>
    %12 = arith.addf %9, %11 : vector<8x8xf32>
    %13 = tpu.iota {dimensions = array<i32: 1>} : vector<8x8xi32>
    %c4_i32 = arith.constant 4 : i32
    %14 = vector.broadcast %c4_i32 : i32 to vector<8x8xi32>
    %15 = arith.cmpi slt, %13, %14 : vector<8x8xi32>
    %cst_11 = arith.constant 0xFF800000 : f32
    %16 = vector.broadcast %cst_11 : f32 to vector<8x8xf32>
    %17 = arith.select %15, %12, %16 : vector<8x8xi1>, vector<8x8xf32>
    %cst_12 = arith.constant dense<0xFF800000> : vector<8xf32>
    %18 = vector.multi_reduction <maximumf>, %17, %cst_12 [1] : vector<8x8xf32> to vector<8xf32>
    %19 = vector.shape_cast %18 : vector<8xf32> to vector<8x1xf32>
    %20 = vector.broadcast %19 : vector<8x1xf32> to vector<8x8xf32>
    %21 = arith.subf %17, %20 : vector<8x8xf32>
    %22 = math.exp %21 : vector<8x8xf32>
    %cst_13 = arith.constant dense<0.000000e+00> : vector<8xf32>
    %23 = vector.multi_reduction <add>, %22, %cst_13 [1] : vector<8x8xf32> to vector<8xf32>
    %24 = vector.shape_cast %23 : vector<8xf32> to vector<8x1xf32>
    %25 = math.log %24 : vector<8x1xf32>
    %26 = arith.addf %19, %25 : vector<8x1xf32>
    %c5_i32 = arith.constant 5 : i32
    %27 = vector.broadcast %c5_i32 : i32 to vector<8x8xi32>
    %28 = arith.cmpi eq, %13, %27 : vector<8x8xi32>
    %29 = vector.shape_cast %26 : vector<8x1xf32> to vector<8x1xf32>
    %30 = vector.broadcast %29 : vector<8x1xf32> to vector<8x8xf32>
    %31 = arith.select %28, %30, %12 : vector<8x8xi1>, vector<8x8xf32>
    %c0_14 = arith.constant 0 : index
    %c0_15 = arith.constant 0 : index
    %32 = vector.load %arg6[%c0_14, %c0_15] : memref<8x8xf32, #tpu.memory_space<vmem>>, vector<8x8xf32>
    tpu.vector_store %arg6[%c0_14, %c0_15], %31 {strides = array<i32>} : memref<8x8xf32, #tpu.memory_space<vmem>>, vector<8x8xf32>,
    return
  }
  func.func @transform_0(%arg0: i32) -> (i32, i32) {
    %c0_i32 = arith.constant 0 : i32
    %c0_i32_0 = arith.constant 0 : i32
    return %arg0, %c0_i32 : i32, i32
  }
  func.func @transform_1(%arg0: i32) -> (i32, i32) {
    %c0_i32 = arith.constant 0 : i32
    %c0_i32_0 = arith.constant 0 : i32
    %c0_i32_1 = arith.constant 0 : i32
    return %c0_i32, %c0_i32_0 : i32, i32
  }
  func.func @transform_2(%arg0: i32) -> (i32, i32) {
    %c0_i32 = arith.constant 0 : i32
    %c0_i32_0 = arith.constant 0 : i32
    %c0_i32_1 = arith.constant 0 : i32
    return %c0_i32, %c0_i32_0 : i32, i32
  }
  func.func @transform_3(%arg0: i32) -> (i32, i32) {
    %c0_i32 = arith.constant 0 : i32
    %c0_i32_0 = arith.constant 0 : i32
    %c0_i32_1 = arith.constant 0 : i32
    return %c0_i32, %c0_i32_0 : i32, i32
  }
  func.func @transform_4(%arg0: i32) -> (i32, i32) {
    %c0_i32 = arith.constant 0 : i32
    %c0_i32_0 = arith.constant 0 : i32
    %c0_i32_1 = arith.constant 0 : i32
    return %c0_i32, %c0_i32_0 : i32, i32
  }
  func.func @transform_5(%arg0: i32) -> (i32, i32) {
    %c0_i32 = arith.constant 0 : i32
    %c0_i32_0 = arith.constant 0 : i32
    return %arg0, %c0_i32 : i32, i32
  }
}

</mosaic_0001>

<bundles_post_ra>
// kernel: policy_value_forward.1
= control target key start
LH: loop header
LB: loop body
LE: loop exit
PB: predicated region body
PF: predicated region fallthrough
CT: control target
= control target key end

     0   :  { %vm29_vm0 = vcmask 64512   ;;  %v313_v0 = vmov 0.0   ;;  %vm314_vm1 = vmmov 0   ;;  %v315_v4 = vmov 0.0|0.0   ;;  %s413_s1 = inlined_call_operand.vmem [shape: f32[8,128], index: 1, kind: input, shape index: {}]   ;;  %s414_s0 = inlined_call_operand.vmem [shape: f32[8,8], index: 0, kind: input, shape index: {}]   ;;  %s415_s3 = inlined_call_operand.vmem [shape: f32[128,8], index: 3, kind: input, shape index: {}]   ;;  %s416_s2 = inlined_call_operand.vmem [shape: f32[1,128], index: 2, kind: input, shape index: {}]   ;;  %s417_s4 = inlined_call_operand.vmem [shape: f32[1,8], index: 4, kind: input, shape index: {}]   ;;  %s418_s5 = inlined_call_operand.vmem [shape: f32[8,8], index: 5, kind: output, shape index: {}]  }
   0x1   :  { %242 = vmatprep.subr.mxu0 %v313_v0  ;;  %v21_v1 = vld [vmem:[%s413_s1] sm:$0xff]  ;;  %244 = vmatprep.mubr.msk.f32.mxu0 %vm314_vm1, %v313_v0  ;;  %v105_v5 = vld [vmem:[%s415_s3 + $0x8] sm:$0xff]  ;;  %v106_v6 = vld [vmem:[%s415_s3 + $0x10] sm:$0xff]  ;;  %v197_v33 = vlaneseq }
   0x2   :  { %v20_v2 = vld [vmem:[%s414_s0] sm:$0xff]  ;;  %243 = vmatpush3.msra.mxu0 %v21_v1  ;;  %282 = vmatprep.subr.bf16.mxu1 %v315_v4  ;;  %v107_v7 = vld [vmem:[%s415_s3 + $0x18] sm:$0xff]  ;;  %v109_v11 = vld [vmem:[%s415_s3 + $0x28] sm:$0xff] }
   0x3   :  { %v104_v3 = vld [vmem:[%s415_s3] sm:$0xff]  ;;  %245 = vmatmul.mubr.msk.f32.vlgmr.msra.gmra.mrb[0].mxu0 %vm29_vm0, %v20_v2  ;;  %279 = vmatprep.mubr.msk.f32.mxu1 %vm314_vm1, %v313_v0  ;;  %v286_v9 = vpack.c.bf16 %v107_v7, %v106_v6  ;;  %v110_v13 = vld [vmem:[%s415_s3 + $0x30] sm:$0xff]  ;;  %v111_v14 = vld [vmem:[%s415_s3 + $0x38] sm:$0xff]  ;;  %v198_v34 = vand.u32 127, %v197_v33 }
   0x4   :  { %v283_v8 = vpack.c.bf16 %v105_v5, %v104_v3  ;;  %v108_v10 = vld [vmem:[%s415_s3 + $0x20] sm:$0xff]  ;;  %v292_v15 = vpack.c.bf16 %v111_v14, %v110_v13  ;;  %v113_v17 = vld [vmem:[%s415_s3 + $0x48] sm:$0xff]  ;;  %v114_v19 = vld [vmem:[%s415_s3 + $0x50] sm:$0xff] }
   0x5   :  { %v289_v12 = vpack.c.bf16 %v109_v11, %v108_v10  ;;  %v112_v16 = vld [vmem:[%s415_s3 + $0x40] sm:$0xff]  ;;  %v115_v20 = vld [vmem:[%s415_s3 + $0x58] sm:$0xff]  ;;  %v117_v23 = vld [vmem:[%s415_s3 + $0x68] sm:$0xff]  ;;  %vm199_vm2 = vcmp.lt.s32.totalorder %v198_v34, 4  ;;  %vm213_vm3 = vcmp.eq.s32.totalorder %v198_v34, 5 }
   0x6   :  { %284 = vmatpush3.bf16.msra.mxu1 %v283_v8  ;;  %v295_v18 = vpack.c.bf16 %v113_v17, %v112_v16  ;;  %v298_v21 = vpack.c.bf16 %v115_v20, %v114_v19  ;;  %v116_v22 = vld [vmem:[%s415_s3 + $0x60] sm:$0xff]  ;;  %v118_v25 = vld [vmem:[%s415_s3 + $0x70] sm:$0xff]  ;;  %v119_v26 = vld [vmem:[%s415_s3 + $0x78] sm:$0xff] }
   0x7   :  { %285 = vmatprep.subr.bf16.mxu1 %v315_v4  ;;  %v301_v24 = vpack.c.bf16 %v117_v23, %v116_v22  ;;  %v304_v27 = vpack.c.bf16 %v119_v26, %v118_v25  ;;  %v220_v28 = vld [vmem:[%s416_s2] ss:$0 sm:$0xff] }
   0x8   :  { %v222_v35 = vld [vmem:[%s417_s4] ss:$0 sm:$0xff] }
   0xa   :  { %287 = vmatpush3.bf16.msra.mxu1 %v286_v9 }
   0xb   :  { %288 = vmatprep.subr.bf16.mxu1 %v315_v4 }
   0xe   :  { %290 = vmatpush3.bf16.msra.mxu1 %v289_v12 }
   0xf   :  { %291 = vmatprep.subr.bf16.mxu1 %v315_v4 }
  0x12   :  { %293 = vmatpush3.bf16.msra.mxu1 %v292_v15 }
  0x13   :  { %294 = vmatprep.subr.bf16.mxu1 %v315_v4 }
  0x16   :  { %296 = vmatpush3.bf16.msra.mxu1 %v295_v18 }
  0x17   :  { %297 = vmatprep.subr.bf16.mxu1 %v315_v4 }
  0x1a   :  { %299 = vmatpush3.bf16.msra.mxu1 %v298_v21 }
  0x1b   :  { %300 = vmatprep.subr.bf16.mxu1 %v315_v4 }
  0x1e   :  { %302 = vmatpush3.bf16.msra.mxu1 %v301_v24 }
  0x1f   :  { %303 = vmatprep.subr.bf16.mxu1 %v315_v4 }
  0x22   :  { %305 = vmatpush3.bf16.msra.mxu1 %v304_v27 }
  0xd6   :  { %v99_v29 = vpop.f32.mrb[0].mxu0 }
  0xd7   :  { %v100_v30 = vadd.f32 %v220_v28, %v99_v29  ;;  %v246_v31 = vpop.f32.mrb[1].mxu0 }
  0xd9   :  { %v103_v32 = vmax.f32 %v100_v30, 0.0 }
  0xdb   :  { %280 = vmatmul.mubr.f32.vlgmr.msra.gmra.mrb[0].mxu1 %v103_v32 }
 0x1ae   :  { %v193_v36 = vpop.f32.mrb[0].mxu1 }
 0x1af   :  { %v194_v37 = vadd.f32 %v222_v35, %v193_v36  ;;  %v281_v38 = vpop.f32.mrb[1].mxu1 }
 0x1b1   :  { %v200_v39 = vsel %vm199_vm2, %v194_v37, -inf }
 0x1b2   :  { %v201_v40 = vsel %vm29_vm0, %v200_v39, -inf }
 0x1b3   :  { %202 = vmax.xlane.f32.xlu0 %v201_v40 }
 0x240   :  { %v203_v41 = vpop.xlane.xlu0 %202 }
 0x241   :  { %v204_v42 = vsub.f32 %v200_v39, %v203_v41 }
 0x243   :  { %v205_v43 = vmul.f32 1.442695, %v204_v42 }
 0x245   :  { %309 = vpow2.f32 %v205_v43 }
 0x24f   :  { %v310_v44 = vpop.eup %309 }
 0x250   :  { %v207_v45 = vsel %vm29_vm0, %v310_v44, 0.0 }
 0x251   :  { %208 = vadd.xlane.f32.xlu0 %v207_v45 }
 0x2de   :  { %v209_v46 = vpop.xlane.xlu0 %208 }
 0x2df   :  { %311 = vlog2.f32 %v209_v46 }
 0x2e9   :  { %v312_v47 = vpop.eup %311 }
 0x2ea   :  { %v211_v48 = vmul.f32 0.6931472, %v312_v47 }
 0x2ec   :  { %v212_v49 = vadd.f32 %v211_v48, %v203_v41 }
 0x2ee   :  { %v214_v50 = vsel %vm213_vm3, %v212_v49, %v194_v37 }
 0x2ef   :  { %215 = vst.msk [vmem:[%s418_s5] sm:$0xff] %vm29_vm0, %v214_v50 }

</bundles_post_ra>
